<compile_context>
chip_gen: v6e
topology: v6e:2x2x1
jax: 0.10.0
libtpu: 0.0.40
codegen_flags: <defaults>
</compile_context>

<pallas_src>
import math
from functools import partial

import jax
import jax.numpy as jnp
from jax import lax
from jax.experimental import pallas as pl
from jax.experimental.pallas import tpu as pltpu


def _round_up(x, m):
    return ((x + m - 1) // m) * m


# ---------------------------------------------------------------------------
# One-time parameter layout prep
# ---------------------------------------------------------------------------
def prepare_embedding_tables(e_embed, r_embed, *, z_dim, lane_pad=128):
    """[n, 2*z_dim] f32 (mean||logvar)  ->  [2*z_dim, n_pad] bf16 (mean||std).

    * std = exp(0.5*logvar) is computed HERE, in f32, once per parameter update
      (O(n*z_dim)) so the kernel never runs exp().
    * Transposed: entities/relations sit on the lane axis, so the in-kernel
      one-hot gather directly produces [2*z_dim, tm] operands with the triples
      lane-dense and the mean/std split a sublane-aligned slice.
    * n is zero-padded to a multiple of 128; padded columns are never indexed.
    """
    def prep(tab):
        tab = jnp.asarray(tab, jnp.float32)
        mean, logvar = tab[:, :z_dim], tab[:, z_dim:]
        std = jnp.exp(0.5 * logvar)                       # f32, then bf16 cast
        t = jnp.concatenate([mean, std], axis=1).T.astype(jnp.bfloat16)
        n = t.shape[1]
        return jnp.pad(t, ((0, 0), (0, _round_up(n, lane_pad) - n)))

    return prep(e_embed), prep(r_embed)


# ---------------------------------------------------------------------------
# Kernel bodies
# ---------------------------------------------------------------------------
def _tile_scores(e_tab, r_tab, s_idx, p_idx, o_idx, eps_s, eps_p, eps_o, z_dim):
    """Score one tile of `tm` triples.

    e_tab / r_tab : (2*z_dim, n_pad) bf16, rows [0:z_dim]=mean, [z_dim:]=std.
    *_idx         : (1, tm) int32 lane vectors of entity / relation ids.
    eps_*         : (z_dim, tm) f32 standard-normal noise.
    returns       : (1, tm) f32 raw DistMult scores (lane-dense).
    """
    def gather(tab, idx):
        # Fused embedding gather: one-hot bf16 matmul on the otherwise-idle
        # MXU.  (2*z_dim, n_pad) @ (n_pad, tm) -> (2*z_dim, tm) f32.
        n_pad, tm = tab.shape[1], idx.shape[1]
        onehot = (lax.broadcasted_iota(jnp.int32, (n_pad, tm), 0)
                  == idx).astype(tab.dtype)
        return jnp.dot(tab, onehot, preferred_element_type=jnp.float32)

    def reparam(g, eps):
        # g is already f32 from the MXU; mean/std are free sublane-aligned
        # static slices (no full-block cast temporary).
        return eps * g[z_dim:, :] + g[:z_dim, :]

    z_s = reparam(gather(e_tab, s_idx), eps_s)
    z_p = reparam(gather(r_tab, p_idx), eps_p)
    z_o = reparam(gather(e_tab, o_idx), eps_o)

    # DistMult: elementwise triple product, reduce over the embedding axis
    # (sublanes) -> lane-dense (1, tm) row of raw scores.
    return jnp.sum(z_s * z_p * z_o, axis=0, keepdims=True)


def _vlink_kernel_hwrng(z_dim, seed_ref, s_ref, p_ref, o_ref,
                        e_tab_ref, r_tab_ref, out_ref):
    """TPU path: eps drawn in-kernel with the hardware PRNG."""
    tm = out_ref.shape[1]
    # (seed, program_id) as separate seed words -> decorrelated per-tile
    # streams; one 3*z_dim draw per block instead of three PRNG restarts.
    pltpu.prng_seed(seed_ref[0], pl.program_id(0))
    eps = pltpu.stateful_normal((3 * z_dim, tm), jnp.float32)
    out_ref[...] = _tile_scores(
        e_tab_ref[...], r_tab_ref[...],
        s_ref[...], p_ref[...], o_ref[...],
        eps[:z_dim], eps[z_dim:2 * z_dim], eps[2 * z_dim:], z_dim)


def _vlink_kernel_eps(z_dim, s_ref, p_ref, o_ref, es_ref, ep_ref, eo_ref,
                      e_tab_ref, r_tab_ref, out_ref):
    """Portable path (CPU / interpret): eps streamed in as bf16 blocks."""
    out_ref[...] = _tile_scores(
        e_tab_ref[...], r_tab_ref[...],
        s_ref[...], p_ref[...], o_ref[...],
        es_ref[...].astype(jnp.float32),
        ep_ref[...].astype(jnp.float32),
        eo_ref[...].astype(jnp.float32), z_dim)


# ---------------------------------------------------------------------------
# Tiling / VMEM heuristic
# ---------------------------------------------------------------------------
_VMEM_BUDGET = 20 << 20   # stay under the 32 MiB scoped default on every gen
                          # (and comfortably inside v7x's 64 MiB physical VMEM)


def _choose_tiling(M, tm_req, z_dim, n_pad_max, eps_streamed):
    """Pick the lane-tile size and grid length from a per-lane VMEM estimate
    that includes the in-kernel f32 temporaries, not just the DMA buffers."""
    per_lane = (3 * 2 * z_dim * 4        # gathered [mean||std] f32, 3 streams
                + 3 * z_dim * 4          # z_s / z_p / z_o
                + 3 * z_dim * 4          # eps (f32)
                + n_pad_max * 2          # one one-hot live at a time (bf16)
                + 2 * (3 * 4 + 4))       # double-buffered idx streams + out
    if eps_streamed:
        per_lane += 2 * 3 * z_dim * 2    # double-buffered bf16 eps streams

    tm_cap = max(128, (_VMEM_BUDGET // per_lane) // 128 * 128)
    tm = max(128, min(tm_req, tm_cap) // 128 * 128)
    m128 = _round_up(max(M, 1), 128)
    tm = min(tm, m128)
    steps = math.ceil(m128 / tm)
    # v7x has two TensorCores: keep an even number of >=2 "parallel" grid
    # steps whenever there is enough work to split.
    if m128 >= 256:
        steps = max(steps, 2)
        steps += steps % 2
        tm = _round_up(math.ceil(m128 / steps), 128)
    return tm, steps


# ---------------------------------------------------------------------------
# Forward pass
# ---------------------------------------------------------------------------
@partial(jax.jit, static_argnames=("z_dim", "tm", "use_hw_rng"))
def _forward_impl(e_tab_t, r_tab_t, s, p, o, seed, *, z_dim, tm, use_hw_rng):
    assert z_dim % 8 == 0, "z_dim must be a multiple of 8 (sublane tile)"
    assert e_tab_t.shape[0] == 2 * z_dim and r_tab_t.shape[0] == 2 * z_dim

    bs, seq = s.shape
    M = bs * seq
    n_pad_max = max(e_tab_t.shape[1], r_tab_t.shape[1])
    tm, steps = _choose_tiling(M, tm, z_dim, n_pad_max,
                               eps_streamed=not use_hw_rng)
    M_pad = steps * tm

    def flat_pad_idx(x):
        xf = x.reshape(1, -1).astype(jnp.int32)
        # pad with index 0 (a valid row) so the tail tile gathers real data;
        # padded score columns are sliced off below.
        return jnp.pad(xf, ((0, 0), (0, M_pad - M)))

    s_idx, p_idx, o_idx = flat_pad_idx(s), flat_pad_idx(p), flat_pad_idx(o)

    idx_spec = pl.BlockSpec((1, tm), lambda i, *_: (0, i))
    out_spec = pl.BlockSpec((1, tm), lambda i, *_: (0, i))
    # Whole tables resident in VMEM (constant block index -> no re-fetch).
    tab_spec_e = pl.BlockSpec(e_tab_t.shape, lambda i, *_: (0, 0))
    tab_spec_r = pl.BlockSpec(r_tab_t.shape, lambda i, *_: (0, 0))
    out_shape = jax.ShapeDtypeStruct((1, M_pad), jnp.float32)

    if use_hw_rng:
        # Real TPU: hardware PRNG inside the kernel, seed via scalar prefetch.
        seed_arr = jnp.asarray(seed, jnp.int32).reshape((1,))
        grid_spec = pltpu.PrefetchScalarGridSpec(
            num_scalar_prefetch=1,
            grid=(steps,),
            in_specs=[idx_spec, idx_spec, idx_spec, tab_spec_e, tab_spec_r],
            out_specs=out_spec)
        scores = pl.pallas_call(
            partial(_vlink_kernel_hwrng, z_dim),
            out_shape=out_shape,
            grid_spec=grid_spec,
            compiler_params=pltpu.CompilerParams(
                dimension_semantics=("parallel",)),
        )(seed_arr, s_idx, p_idx, o_idx, e_tab_t, r_tab_t)
    else:
        # Portable fallback (CPU / interpret): exact N(0,1) eps generated by
        # XLA and streamed into the kernel as bf16 blocks.
        key = jax.random.PRNGKey(jnp.asarray(seed, jnp.int32))
        eps = jax.random.normal(key, (3, z_dim, M_pad), jnp.bfloat16)
        eps_spec = pl.BlockSpec((z_dim, tm), lambda i: (0, i))
        scores = pl.pallas_call(
            partial(_vlink_kernel_eps, z_dim),
            out_shape=out_shape,
            grid=(steps,),
            in_specs=[idx_spec, idx_spec, idx_spec,
                      eps_spec, eps_spec, eps_spec,
                      tab_spec_e, tab_spec_r],
            out_specs=out_spec,
        )(s_idx, p_idx, o_idx, eps[0], eps[1], eps[2], e_tab_t, r_tab_t)

    # scores keep the (batch, seq) shape of the index tensors.
    return scores[0, :M].reshape(bs, seq)


def vlink_predictor_forward(e_tab_t, r_tab_t, s, p, o, seed, *, z_dim, tm=4096):
    """Forward pass of VLinkPredictor (reciprocal=False -> single 'tail' mode)."""
    use_hw_rng = jax.default_backend() == "tpu"
    return _forward_impl(e_tab_t, r_tab_t, s, p, o, seed,
                         z_dim=z_dim, tm=tm, use_hw_rng=use_hw_rng)


# ---------------------------------------------------------------------------
# Pure-JAX reference for the noise-free path (std ~ 0)
# ---------------------------------------------------------------------------
def _reference_mean_only(e_tab_t, r_tab_t, s, p, o, z_dim):
    sf, pf, of = s.reshape(-1), p.reshape(-1), o.reshape(-1)
    m_s = jnp.take(e_tab_t[:z_dim], sf, axis=1).astype(jnp.float32)
    m_p = jnp.take(r_tab_t[:z_dim], pf, axis=1).astype(jnp.float32)
    m_o = jnp.take(e_tab_t[:z_dim], of, axis=1).astype(jnp.float32)
    return jnp.sum(m_s * m_p * m_o, axis=0).reshape(s.shape)


if __name__ == "__main__":
    # Small, module-consistent shapes.
    n_e, n_r = 10, 5          # number of entities / relations
    z_dim = 32                # 'embedding' arg of VLinkPredictor
    bs, seq = 2, 8            # index tensors s, p, o have shape (bs, seq)

    key = jax.random.PRNGKey(0)
    k_ee, k_re, k_s, k_p, k_o = jax.random.split(key, 5)

    # Deterministic parameter init (nn.Embedding default ~ N(0, 1)).
    e_embed = jax.random.normal(k_ee, (n_e, 2 * z_dim), jnp.float32)
    r_embed = jax.random.normal(k_re, (n_r, 2 * z_dim), jnp.float32)

    # Deterministic triple indices.
    s = jax.random.randint(k_s, (bs, seq), 0, n_e, dtype=jnp.int32)
    p = jax.random.randint(k_p, (bs, seq), 0, n_r, dtype=jnp.int32)
    o = jax.random.randint(k_o, (bs, seq), 0, n_e, dtype=jnp.int32)

    # --- Test 1: noise-free path.  logvar = -100 => std = exp(-50) ~ 2e-22, so
    #     the score reduces to the DistMult product of the means, which the
    #     pure-JAX reference reproduces.
    e_det = e_embed.at[:, z_dim:].set(-100.0)
    r_det = r_embed.at[:, z_dim:].set(-100.0)
    e_t_det, r_t_det = prepare_embedding_tables(e_det, r_det, z_dim=z_dim)

    scores_det = jax.block_until_ready(
        vlink_predictor_forward(e_t_det, r_t_det, s, p, o, 0, z_dim=z_dim))
    ref = _reference_mean_only(e_t_det, r_t_det, s, p, o, z_dim)
    assert scores_det.shape == (bs, seq)
    assert jnp.allclose(scores_det, ref, atol=1e-3, rtol=1e-3)

    # --- Test 2: stochastic path.  eps ~ N(0,1) must be deterministic per
    #     seed, finite, and actually depend on the seed.
    e_t, r_t = prepare_embedding_tables(e_embed, r_embed, z_dim=z_dim)
    a1 = jax.block_until_ready(
        vlink_predictor_forward(e_t, r_t, s, p, o, 1, z_dim=z_dim))
    a2 = jax.block_until_ready(
        vlink_predictor_forward(e_t, r_t, s, p, o, 1, z_dim=z_dim))
    b = jax.block_until_ready(
        vlink_predictor_forward(e_t, r_t, s, p, o, 2, z_dim=z_dim))

    assert a1.shape == (bs, seq)
    assert bool(jnp.all(jnp.isfinite(a1)))
    assert bool(jnp.array_equal(a1, a2))          # same seed -> identical
    assert not bool(jnp.allclose(a1, b))          # different seed -> different

    print("KERNEL_OK")
</pallas_src>

<mosaic_0001>
module attributes {stable_mosaic.version = 11 : i64} {
  func.func @_vlink_kernel_eps(%arg0: i32, %arg1: memref<1x128xi32, #tpu.memory_space<vmem>>, %arg2: memref<1x128xi32, #tpu.memory_space<vmem>>, %arg3: memref<1x128xi32, #tpu.memory_space<vmem>>, %arg4: memref<32x128xbf16, #tpu.memory_space<vmem>>, %arg5: memref<32x128xbf16, #tpu.memory_space<vmem>>, %arg6: memref<32x128xbf16, #tpu.memory_space<vmem>>, %arg7: memref<64x128xbf16, #tpu.memory_space<vmem>>, %arg8: memref<64x128xbf16, #tpu.memory_space<vmem>>, %arg9: memref<1x128xf32, #tpu.memory_space<vmem>>) attributes {dimension_semantics = [#tpu.dimension_semantics<arbitrary>], iteration_bounds = array<i64: 1>, scalar_prefetch = 0 : i64, scratch_operands = 0 : i64, tpu.core_type = #tpu.core_type<tc>, window_params = [{transform_indices = @transform_0, window_bounds = array<i64: 1, 128>}, {transform_indices = @transform_1, window_bounds = array<i64: 1, 128>}, {transform_indices = @transform_2, window_bounds = array<i64: 1, 128>}, {transform_indices = @transform_3, window_bounds = array<i64: 32, 128>}, {transform_indices = @transform_4, window_bounds = array<i64: 32, 128>}, {transform_indices = @transform_5, window_bounds = array<i64: 32, 128>}, {pipeline_mode = #tpu.pipeline_mode<synchronous>, transform_indices = @transform_6, window_bounds = array<i64: 64, 128>}, {pipeline_mode = #tpu.pipeline_mode<synchronous>, transform_indices = @transform_7, window_bounds = array<i64: 64, 128>}, {transform_indices = @transform_8, window_bounds = array<i64: 1, 128>}]} {
    %c0 = arith.constant 0 : index
    %c0_0 = arith.constant 0 : index
    %0 = vector.load %arg7[%c0, %c0_0] : memref<64x128xbf16, #tpu.memory_space<vmem>>, vector<64x128xbf16>
    %c0_1 = arith.constant 0 : index
    %c0_2 = arith.constant 0 : index
    %1 = vector.load %arg8[%c0_1, %c0_2] : memref<64x128xbf16, #tpu.memory_space<vmem>>, vector<64x128xbf16>
    %c0_3 = arith.constant 0 : index
    %c0_4 = arith.constant 0 : index
    %2 = vector.load %arg1[%c0_3, %c0_4] : memref<1x128xi32, #tpu.memory_space<vmem>>, vector<1x128xi32>
    %c0_5 = arith.constant 0 : index
    %c0_6 = arith.constant 0 : index
    %3 = vector.load %arg2[%c0_5, %c0_6] : memref<1x128xi32, #tpu.memory_space<vmem>>, vector<1x128xi32>
    %c0_7 = arith.constant 0 : index
    %c0_8 = arith.constant 0 : index
    %4 = vector.load %arg3[%c0_7, %c0_8] : memref<1x128xi32, #tpu.memory_space<vmem>>, vector<1x128xi32>
    %c0_9 = arith.constant 0 : index
    %c0_10 = arith.constant 0 : index
    %5 = vector.load %arg4[%c0_9, %c0_10] : memref<32x128xbf16, #tpu.memory_space<vmem>>, vector<32x128xbf16>
    %6 = arith.extf %5 : vector<32x128xbf16> to vector<32x128xf32>
    %c0_11 = arith.constant 0 : index
    %c0_12 = arith.constant 0 : index
    %7 = vector.load %arg5[%c0_11, %c0_12] : memref<32x128xbf16, #tpu.memory_space<vmem>>, vector<32x128xbf16>
    %8 = arith.extf %7 : vector<32x128xbf16> to vector<32x128xf32>
    %c0_13 = arith.constant 0 : index
    %c0_14 = arith.constant 0 : index
    %9 = vector.load %arg6[%c0_13, %c0_14] : memref<32x128xbf16, #tpu.memory_space<vmem>>, vector<32x128xbf16>
    %10 = arith.extf %9 : vector<32x128xbf16> to vector<32x128xf32>
    %11 = tpu.iota {dimensions = array<i32: 0>} : vector<128x128xi32>
    %12 = vector.broadcast %2 : vector<1x128xi32> to vector<128x128xi32>
    %13 = arith.cmpi eq, %11, %12 : vector<128x128xi32>
    %14 = arith.extui %13 : vector<128x128xi1> to vector<128x128xi32>
    %15 = arith.sitofp %14 : vector<128x128xi32> to vector<128x128xf32>
    %16 = arith.truncf %15 : vector<128x128xf32> to vector<128x128xbf16>
    %cst = arith.constant dense<0.000000e+00> : vector<64x128xf32>
    %17 = tpu.matmul %0, %16, %cst {dimension_numbers = #tpu.dot_dimension_numbers<[1], [0], [0], [1], [0, 0, 1, 1], [], []>} : vector<64x128xbf16>, vector<128x128xbf16>, vector<64x128xf32> -> vector<64x128xf32>
    %18 = vector.extract_strided_slice %17 {offsets = [32, 0], sizes = [32, 128], strides = [1, 1]} : vector<64x128xf32> to vector<32x128xf32>
    %19 = arith.mulf %6, %18 : vector<32x128xf32>
    %20 = vector.extract_strided_slice %17 {offsets = [0, 0], sizes = [32, 128], strides = [1, 1]} : vector<64x128xf32> to vector<32x128xf32>
    %21 = arith.addf %19, %20 : vector<32x128xf32>
    %22 = tpu.iota {dimensions = array<i32: 0>} : vector<128x128xi32>
    %23 = vector.broadcast %3 : vector<1x128xi32> to vector<128x128xi32>
    %24 = arith.cmpi eq, %22, %23 : vector<128x128xi32>
    %25 = arith.extui %24 : vector<128x128xi1> to vector<128x128xi32>
    %26 = arith.sitofp %25 : vector<128x128xi32> to vector<128x128xf32>
    %27 = arith.truncf %26 : vector<128x128xf32> to vector<128x128xbf16>
    %cst_15 = arith.constant dense<0.000000e+00> : vector<64x128xf32>
    %28 = tpu.matmul %1, %27, %cst_15 {dimension_numbers = #tpu.dot_dimension_numbers<[1], [0], [0], [1], [0, 0, 1, 1], [], []>} : vector<64x128xbf16>, vector<128x128xbf16>, vector<64x128xf32> -> vector<64x128xf32>
    %29 = vector.extract_strided_slice %28 {offsets = [32, 0], sizes = [32, 128], strides = [1, 1]} : vector<64x128xf32> to vector<32x128xf32>
    %30 = arith.mulf %8, %29 : vector<32x128xf32>
    %31 = vector.extract_strided_slice %28 {offsets = [0, 0], sizes = [32, 128], strides = [1, 1]} : vector<64x128xf32> to vector<32x128xf32>
    %32 = arith.addf %30, %31 : vector<32x128xf32>
    %33 = tpu.iota {dimensions = array<i32: 0>} : vector<128x128xi32>
    %34 = vector.broadcast %4 : vector<1x128xi32> to vector<128x128xi32>
    %35 = arith.cmpi eq, %33, %34 : vector<128x128xi32>
    %36 = arith.extui %35 : vector<128x128xi1> to vector<128x128xi32>
    %37 = arith.sitofp %36 : vector<128x128xi32> to vector<128x128xf32>
    %38 = arith.truncf %37 : vector<128x128xf32> to vector<128x128xbf16>
    %cst_16 = arith.constant dense<0.000000e+00> : vector<64x128xf32>
    %39 = tpu.matmul %0, %38, %cst_16 {dimension_numbers = #tpu.dot_dimension_numbers<[1], [0], [0], [1], [0, 0, 1, 1], [], []>} : vector<64x128xbf16>, vector<128x128xbf16>, vector<64x128xf32> -> vector<64x128xf32>
    %40 = vector.extract_strided_slice %39 {offsets = [32, 0], sizes = [32, 128], strides = [1, 1]} : vector<64x128xf32> to vector<32x128xf32>
    %41 = arith.mulf %10, %40 : vector<32x128xf32>
    %42 = vector.extract_strided_slice %39 {offsets = [0, 0], sizes = [32, 128], strides = [1, 1]} : vector<64x128xf32> to vector<32x128xf32>
    %43 = arith.addf %41, %42 : vector<32x128xf32>
    %44 = arith.mulf %21, %32 : vector<32x128xf32>
    %45 = arith.mulf %44, %43 : vector<32x128xf32>
    %cst_17 = arith.constant dense<0.000000e+00> : vector<128xf32>
    %46 = vector.multi_reduction <add>, %45, %cst_17 [0] : vector<32x128xf32> to vector<128xf32>
    %47 = vector.shape_cast %46 : vector<128xf32> to vector<1x128xf32>
    %c0_18 = arith.constant 0 : index
    %c0_19 = arith.constant 0 : index
    %48 = vector.load %arg9[%c0_18, %c0_19] : memref<1x128xf32, #tpu.memory_space<vmem>>, vector<1x128xf32>
    tpu.vector_store %arg9[%c0_18, %c0_19], %47 {strides = array<i32>} : memref<1x128xf32, #tpu.memory_space<vmem>>, vector<1x128xf32>,
    return
  }
  func.func @transform_0(%arg0: i32) -> (i32, i32) {
    %c0_i32 = arith.constant 0 : i32
    %c0_i32_0 = arith.constant 0 : i32
    return %c0_i32, %arg0 : i32, i32
  }
  func.func @transform_1(%arg0: i32) -> (i32, i32) {
    %c0_i32 = arith.constant 0 : i32
    %c0_i32_0 = arith.constant 0 : i32
    return %c0_i32, %arg0 : i32, i32
  }
  func.func @transform_2(%arg0: i32) -> (i32, i32) {
    %c0_i32 = arith.constant 0 : i32
    %c0_i32_0 = arith.constant 0 : i32
    return %c0_i32, %arg0 : i32, i32
  }
  func.func @transform_3(%arg0: i32) -> (i32, i32) {
    %c0_i32 = arith.constant 0 : i32
    %c0_i32_0 = arith.constant 0 : i32
    return %c0_i32, %arg0 : i32, i32
  }
  func.func @transform_4(%arg0: i32) -> (i32, i32) {
    %c0_i32 = arith.constant 0 : i32
    %c0_i32_0 = arith.constant 0 : i32
    return %c0_i32, %arg0 : i32, i32
  }
  func.func @transform_5(%arg0: i32) -> (i32, i32) {
    %c0_i32 = arith.constant 0 : i32
    %c0_i32_0 = arith.constant 0 : i32
    return %c0_i32, %arg0 : i32, i32
  }
  func.func @transform_6(%arg0: i32) -> (i32, i32) {
    %c0_i32 = arith.constant 0 : i32
    %c0_i32_0 = arith.constant 0 : i32
    %c0_i32_1 = arith.constant 0 : i32
    return %c0_i32, %c0_i32_0 : i32, i32
  }
  func.func @transform_7(%arg0: i32) -> (i32, i32) {
    %c0_i32 = arith.constant 0 : i32
    %c0_i32_0 = arith.constant 0 : i32
    %c0_i32_1 = arith.constant 0 : i32
    return %c0_i32, %c0_i32_0 : i32, i32
  }
  func.func @transform_8(%arg0: i32) -> (i32, i32) {
    %c0_i32 = arith.constant 0 : i32
    %c0_i32_0 = arith.constant 0 : i32
    return %c0_i32, %arg0 : i32, i32
  }
}

</mosaic_0001>

<bundles_post_ra>
// kernel: squeeze.11
= control target key start
LH: loop header
LB: loop body
LE: loop exit
PB: predicated region body
PF: predicated region fallthrough
CT: control target
= control target key end

     0   :  { %s77_s0 = inlined_call_operand.vmem [shape: f32[16], index: 0, kind: input, shape index: {}]   ;;  %s78_s1 = inlined_call_operand.hbm [shape: f32[2,8], index: 1, kind: output, shape index: {}]  }
   0x1   :  { %v6_v0 = vld [vmem:[%s77_s0] sm:$0x1] }
   0x2   :  { %2 = vsyncpa [#allocation1], 0  ;;  %7 = vst [vmem:[#allocation3] sm:$0x1] %v6_v0  ;;  %vm9_vm0 = vcmask 64512   ;;  %s59_s0 = smov 120  }
   0x3   :  { %s60_s8 = smov [#allocation0]  }
   0x4   :  { %s29_s9 = sshll.u32 %s60_s8, 4  ;;  %s30_s9 = int_to_ptr.vmem [resolvable:$true] %s29_s9 }
   0x5   :  { %s37_s10 = scalar_lea.vmem %s30_s9, 32  ;;  %p42_p1 = scmp.lt.s32.totalorder %s30_s9, %s30_s9 }
   0x6   :  { %p38_p0 = scmp.ne.s32.totalorder %s30_s9, %s37_s10  ;;  %p43_p2 = scmp.lt.s32.totalorder %s37_s10, %s37_s10 }
   0x8   :  { %p44_p3 = por %p43_p2, %p42_p1 }
   0x9   :  { %v11_v1 = vld [vmem:[#allocation3] sm:$0x1]  }
   0xa   :  { %v8_v2 = vld [vmem:[#allocation3] sm:$0x1]   ;;  %12 = vrot.lane.b32.xlu0 %v11_v1, %s59_s0  ;;  %p45_p4 = pnand %p44_p3, %p38_p0 }
   0xb   :  { %10 = vst.msk [vmem:[#allocation2] sm:$0x1] %vm9_vm0, %v8_v2  }
  0x7c   :  { %v13_v3 = vpop.permute.xlu0 %12  }
  0x7d   :  { %16 = vst.msk [vmem:[#allocation2 + $0x1] sm:$0x1] %vm9_vm0, %v13_v3  }
  0x84   :  { %v21_v4 = vld [vmem:[#allocation2] sm:$0x3] }
  0x85   :  { %24 = vst [vmem:[#allocation0] sm:$0x3] %v21_v4 }
  0x86   :  { %48 = shalt.err (!%p45_p4)
}
  0x87   :  { %32 = dma.vmem_to_hbm [thread:$0]  %s30_s9, 32, %s78_s1, [#allocation1]  }
  0x88   :  { %57 = dma.done.wait [#allocation1], 32  }
  0x89   :  { %58 = vsyncadd [#allocation1], 4294967264 }
  0x8a   :  { %34 = vsyncpa [#allocation1], 1 }

// kernel: _forward_impl.1
= control target key start
LH: loop header
LB: loop body
LE: loop exit
PB: predicated region body
PF: predicated region fallthrough
CT: control target
= control target key end

     0   :  { %v73_v0 = vlaneseq  ;;  %v826_v12 = vmov 1.0|1.0   ;;  %s1253_s0 = inlined_call_operand.vmem [shape: s32[1,128], index: 0, kind: input, shape index: {}]   ;;  %s1254_s1 = inlined_call_operand.vmem [shape: s32[1,128], index: 1, kind: input, shape index: {}]   ;;  %s1255_s6 = inlined_call_operand.vmem [shape: bf16[64,128], index: 6, kind: input, shape index: {}]   ;;  %s1256_s7 = inlined_call_operand.vmem [shape: bf16[64,128], index: 7, kind: input, shape index: {}]   ;;  %s1257_s2 = inlined_call_operand.vmem [shape: s32[1,128], index: 2, kind: input, shape index: {}]   ;;  %s1258_s3 = inlined_call_operand.vmem [shape: bf16[32,128], index: 3, kind: input, shape index: {}]   ;;  %s1259_s4 = inlined_call_operand.vmem [shape: bf16[32,128], index: 4, kind: input, shape index: {}]   ;;  %s1260_s5 = inlined_call_operand.vmem [shape: bf16[32,128], index: 5, kind: input, shape index: {}]   ;;  %s1261_s8 = inlined_call_operand.vmem [shape: f32[1,128], index: 8, kind: output, shape index: {}]  }
   0x1   :  { %v875_v1 = vld [vmem:[%s1253_s0] ss:$0 sm:$0xff]  ;;  %v1118_v32 = vld [vmem:[%s1255_s6 + $0x8] sm:$0xff]   ;;  %v822_v35 = vld [vmem:[%s1255_s6 + $0x10] sm:$0xff]  }
   0x2   :  { %v880_v2 = vld [vmem:[%s1254_s1] ss:$0 sm:$0xff]  ;;  %v882_v3 = vshrl.u32 %v73_v0, 7  ;;  %v821_v33 = vld [vmem:[%s1256_s7 + $0x8] sm:$0xff]   ;;  %v823_v36 = vld [vmem:[%s1256_s7 + $0x10] sm:$0xff]  }
   0x3   :  { %v887_v4 = vld [vmem:[%s1255_s6] sm:$0xff]   ;;  %v824_v38 = vld [vmem:[%s1255_s6 + $0x18] sm:$0xff]   ;;  %v690_v56 = vld [vmem:[%s1258_s3 + $0x8] sm:$0xff]  }
   0x4   :  { %v819_v5 = vld [vmem:[%s1256_s7] sm:$0xff]   ;;  %v893_v6 = vadd.s32 112, %v882_v3  ;;  %v896_v7 = vadd.s32 120, %v882_v3  ;;  %v899_v8 = vadd.s32 96, %v882_v3  ;;  %v902_v9 = vadd.s32 104, %v882_v3  ;;  %745 = vmatprep.mubr.bf16.mxu0 %v887_v4  ;;  %v825_v39 = vld [vmem:[%s1256_s7 + $0x18] sm:$0xff]  }
   0x5   :  { %v906_v10 = vadd.s32 80, %v882_v3  ;;  %v909_v11 = vadd.s32 88, %v882_v3  ;;  %769 = vmatprep.mubr.bf16.mxu1 %v819_v5  ;;  %v933_v13 = vadd.s32 64, %v882_v3  ;;  %v936_v14 = vadd.s32 72, %v882_v3  ;;  %v1096_v30 = vld [vmem:[%s1257_s2] ss:$0 sm:$0xff] }
   0x6   :  { %vm108_vm0 = vcmp.eq.s32.totalorder %v893_v6, %v875_v1  ;;  %vm109_vm1 = vcmp.eq.s32.totalorder %v896_v7, %v875_v1  ;;  %vm265_vm2 = vcmp.eq.s32.totalorder %v893_v6, %v880_v2  ;;  %vm266_vm3 = vcmp.eq.s32.totalorder %v896_v7, %v880_v2  ;;  %v667_v52 = vld [vmem:[%s1258_s3] sm:$0xff]   ;;  %v691_v57 = vld [vmem:[%s1259_s4 + $0x8] sm:$0xff]  }
   0x7   :  { %vm580_vm4 = vmpackc.low %vm109_vm1, %vm108_vm0  ;;  %vm106_vm5 = vcmp.eq.s32.totalorder %v899_v8, %v875_v1  ;;  %vm107_vm6 = vcmp.eq.s32.totalorder %v902_v9, %v875_v1  ;;  %vm263_vm7 = vcmp.eq.s32.totalorder %v899_v8, %v880_v2  ;;  %vm264_vm8 = vcmp.eq.s32.totalorder %v902_v9, %v880_v2  ;;  %v675_v53 = vld [vmem:[%s1259_s4] sm:$0xff]  }
   0x8   :  { %729 = vmatprep.subr.msk.bf16.mxu0 %vm580_vm4, %v826_v12  ;;  %vm617_vm9 = vmpackc.low %vm266_vm3, %vm265_vm2  ;;  %vm104_vm10 = vcmp.eq.s32.totalorder %v906_v10, %v875_v1  ;;  %vm105_vm11 = vcmp.eq.s32.totalorder %v909_v11, %v875_v1  ;;  %vm261_vm13 = vcmp.eq.s32.totalorder %v906_v10, %v880_v2  ;;  %vm262_vm14 = vcmp.eq.s32.totalorder %v909_v11, %v880_v2  ;;  %v683_v60 = vld [vmem:[%s1260_s5] sm:$0xff]  }
   0x9   :  { %753 = vmatprep.subr.msk.bf16.mxu1 %vm617_vm9, %v826_v12  ;;  %730 = vmatpush3.bf16.msk.msra.mxu0 %vm580_vm4, %v826_v12  ;;  %vm582_vm12 = vmpackc.low %vm107_vm6, %vm106_vm5  ;;  %vm102_vm2 = vcmp.eq.s32.totalorder %v933_v13, %v875_v1  ;;  %vm103_vm3 = vcmp.eq.s32.totalorder %v936_v14, %v875_v1  ;;  %v966_v17 = vadd.s32 48, %v882_v3  ;;  %v969_v18 = vadd.s32 56, %v882_v3 }
   0xa   :  { %754 = vmatpush3.bf16.msk.msra.mxu1 %vm617_vm9, %v826_v12  ;;  %731 = vmatprep.subr.msk.bf16.mxu0 %vm582_vm12, %v826_v12  ;;  %vm619_vm15 = vmpackc.low %vm264_vm8, %vm263_vm7  ;;  %vm259_vm4 = vcmp.eq.s32.totalorder %v933_v13, %v880_v2  ;;  %vm260_vm5 = vcmp.eq.s32.totalorder %v936_v14, %v880_v2  ;;  %v996_v21 = vadd.s32 32, %v882_v3  ;;  %v999_v22 = vadd.s32 40, %v882_v3 }
   0xb   :  { %755 = vmatprep.subr.msk.bf16.mxu1 %vm619_vm15, %v826_v12  ;;  %vm953_vm0 = vmpackc.low %vm105_vm11, %vm104_vm10  ;;  %vm100_vm8 = vcmp.eq.s32.totalorder %v966_v17, %v875_v1  ;;  %vm101_vm9 = vcmp.eq.s32.totalorder %v969_v18, %v875_v1  ;;  %vm257_vm10 = vcmp.eq.s32.totalorder %v966_v17, %v880_v2  ;;  %vm258_vm11 = vcmp.eq.s32.totalorder %v969_v18, %v880_v2 }
   0xc   :  { %vm957_vm1 = vmpackc.low %vm262_vm14, %vm261_vm13  ;;  %vm98_vm14 = vcmp.eq.s32.totalorder %v996_v21, %v875_v1  ;;  %v1030_v25 = vadd.s32 16, %v882_v3  ;;  %v1033_v26 = vadd.s32 24, %v882_v3  ;;  %v1064_v29 = vadd.s32 8, %v882_v3 }
   0xd   :  { %732 = vmatpush3.bf16.msk.msra.mxu0 %vm582_vm12, %v826_v12  ;;  %vm983_vm6 = vmpackc.low %vm103_vm3, %vm102_vm2  ;;  %v668_v58 = vunpack.c.l.bf16 %v667_v52  ;;  %v676_v59 = vunpack.c.l.bf16 %v675_v53  ;;  %v669_v61 = vunpack.c.h.bf16 %v667_v52  ;;  %v677_v63 = vunpack.c.h.bf16 %v675_v53 }
   0xe   :  { %756 = vmatpush3.bf16.msk.msra.mxu1 %vm619_vm15, %v826_v12  ;;  %733 = vmatprep.subr.msk.bf16.mxu0 %vm953_vm0, %v826_v12  ;;  %vm987_vm7 = vmpackc.low %vm260_vm5, %vm259_vm4  ;;  %vm99_vm15 = vcmp.eq.s32.totalorder %v999_v22, %v875_v1  ;;  %vm96_vm4 = vcmp.eq.s32.totalorder %v1030_v25, %v875_v1  ;;  %vm97_vm5 = vcmp.eq.s32.totalorder %v1033_v26, %v875_v1  ;;  %v672_v0 = vunpack.c.l.bf16 %v690_v56 }
   0xf   :  { %757 = vmatprep.subr.msk.bf16.mxu1 %vm957_vm1, %v826_v12  ;;  %vm1017_vm12 = vmpackc.low %vm101_vm9, %vm100_vm8  ;;  %v684_v5 = vunpack.c.l.bf16 %v683_v60  ;;  %v685_v20 = vunpack.c.h.bf16 %v683_v60 }
  0x10   :  { %vm1021_vm13 = vmpackc.low %vm258_vm11, %vm257_vm10  ;;  %vm94_vm10 = vcmp.eq.s32.totalorder %v882_v3, %v875_v1  ;;  %vm95_vm11 = vcmp.eq.s32.totalorder %v1064_v29, %v875_v1 }
  0x11   :  { %734 = vmatpush3.bf16.msk.msra.mxu0 %vm953_vm0, %v826_v12  ;;  %vm255_vm0 = vcmp.eq.s32.totalorder %v996_v21, %v880_v2  ;;  %vm1051_vm2 = vmpackc.low %vm99_vm15, %vm98_vm14 }
  0x12   :  { %758 = vmatpush3.bf16.msk.msra.mxu1 %vm957_vm1, %v826_v12  ;;  %735 = vmatprep.subr.msk.bf16.mxu0 %vm983_vm6, %v826_v12  ;;  %vm256_vm1 = vcmp.eq.s32.totalorder %v999_v22, %v880_v2  ;;  %vm592_vm8 = vmpackc.low %vm97_vm5, %vm96_vm4  ;;  %vm421_vm4 = vcmp.eq.s32.totalorder %v902_v9, %v1096_v30 }
  0x13   :  { %759 = vmatprep.subr.msk.bf16.mxu1 %vm987_vm7, %v826_v12  ;;  %vm1055_vm3 = vmpackc.low %vm256_vm1, %vm255_vm0  ;;  %vm422_vm0 = vcmp.eq.s32.totalorder %v893_v6, %v1096_v30  ;;  %vm423_vm1 = vcmp.eq.s32.totalorder %v896_v7, %v1096_v30 }
  0x14   :  { %vm594_vm14 = vmpackc.low %vm95_vm11, %vm94_vm10  ;;  %vm417_vm10 = vcmp.eq.s32.totalorder %v936_v14, %v1096_v30 }
  0x15   :  { %736 = vmatpush3.bf16.msk.msra.mxu0 %vm983_vm6, %v826_v12  ;;  %vm253_vm6 = vcmp.eq.s32.totalorder %v1030_v25, %v880_v2 }
  0x16   :  { %760 = vmatpush3.bf16.msk.msra.mxu1 %vm987_vm7, %v826_v12  ;;  %737 = vmatprep.subr.msk.bf16.mxu0 %vm1017_vm12, %v826_v12  ;;  %vm254_vm7 = vcmp.eq.s32.totalorder %v1033_v26, %v880_v2 }
  0x17   :  { %761 = vmatprep.subr.msk.bf16.mxu1 %vm1021_vm13, %v826_v12  ;;  %vm629_vm9 = vmpackc.low %vm254_vm7, %vm253_vm6  ;;  %vm418_vm6 = vcmp.eq.s32.totalorder %v906_v10, %v1096_v30  ;;  %vm419_vm7 = vcmp.eq.s32.totalorder %v909_v11, %v1096_v30  ;;  %v681_v10 = vunpack.c.h.bf16 %v691_v57 }
  0x19   :  { %738 = vmatpush3.bf16.msk.msra.mxu0 %vm1017_vm12, %v826_v12  ;;  %vm251_vm12 = vcmp.eq.s32.totalorder %v882_v3, %v880_v2 }
  0x1a   :  { %762 = vmatpush3.bf16.msk.msra.mxu1 %vm1021_vm13, %v826_v12  ;;  %739 = vmatprep.subr.msk.bf16.mxu0 %vm1051_vm2, %v826_v12  ;;  %vm252_vm13 = vcmp.eq.s32.totalorder %v1064_v29, %v880_v2  ;;  %v692_v2 = vld [vmem:[%s1260_s5 + $0x8] sm:$0xff]  }
  0x1b   :  { %763 = vmatprep.subr.msk.bf16.mxu1 %vm1055_vm3, %v826_v12  ;;  %vm631_vm15 = vmpackc.low %vm252_vm13, %vm251_vm12  ;;  %vm414_vm12 = vcmp.eq.s32.totalorder %v966_v17, %v1096_v30  ;;  %vm415_vm13 = vcmp.eq.s32.totalorder %v969_v18, %v1096_v30  ;;  %v689_v19 = vunpack.c.h.bf16 %v692_v2 }
  0x1d   :  { %740 = vmatpush3.bf16.msk.msra.mxu0 %vm1051_vm2, %v826_v12  ;;  %vm1111_vm2 = vmpackc.low %vm423_vm1, %vm422_vm0  ;;  %vm413_vm0 = vcmp.eq.s32.totalorder %v999_v22, %v1096_v30 }
  0x1e   :  { %764 = vmatpush3.bf16.msk.msra.mxu1 %vm1055_vm3, %v826_v12  ;;  %741 = vmatprep.subr.msk.bf16.mxu0 %vm592_vm8, %v826_v12  ;;  %vm420_vm3 = vcmp.eq.s32.totalorder %v899_v8, %v1096_v30  ;;  %v673_v8 = vunpack.c.h.bf16 %v690_v56 }
  0x1f   :  { %765 = vmatprep.subr.msk.bf16.mxu1 %vm629_vm9, %v826_v12  ;;  %vm1135_vm5 = vmpackc.low %vm421_vm4, %vm420_vm3  ;;  %vm411_vm3 = vcmp.eq.s32.totalorder %v1033_v26, %v1096_v30 }
  0x21   :  { %742 = vmatpush3.bf16.msk.msra.mxu0 %vm592_vm8, %v826_v12  ;;  %vm1162_vm8 = vmpackc.low %vm419_vm7, %vm418_vm6  ;;  %vm409_vm6 = vcmp.eq.s32.totalorder %v1064_v29, %v1096_v30 }
  0x22   :  { %766 = vmatpush3.bf16.msk.msra.mxu1 %vm629_vm9, %v826_v12  ;;  %743 = vmatprep.subr.msk.bf16.mxu0 %vm594_vm14, %v826_v12  ;;  %vm416_vm9 = vcmp.eq.s32.totalorder %v933_v13, %v1096_v30  ;;  %v688_v13 = vunpack.c.l.bf16 %v692_v2 }
  0x23   :  { %767 = vmatprep.subr.msk.bf16.mxu1 %vm631_vm15, %v826_v12  ;;  %vm656_vm11 = vmpackc.low %vm417_vm10, %vm416_vm9 }
  0x25   :  { %744 = vmatpush3.bf16.msk.msra.mxu0 %vm594_vm14, %v826_v12  ;;  %vm658_vm14 = vmpackc.low %vm415_vm13, %vm414_vm12 }
  0x26   :  { %768 = vmatpush3.bf16.msk.msra.mxu1 %vm631_vm15, %v826_v12  ;;  %777 = vmatprep.subr.msk.bf16.mxu0 %vm1111_vm2, %v826_v12  ;;  %vm412_vm15 = vcmp.eq.s32.totalorder %v996_v21, %v1096_v30 }
  0x27   :  { %801 = vmatprep.subr.msk.bf16.mxu1 %vm1111_vm2, %v826_v12  ;;  %vm660_vm1 = vmpackc.low %vm413_vm0, %vm412_vm15 }
  0x28   :  { %746 = vmatmul.mubr.bf16.vlgmr.msra.gmra.mxu0 %v1118_v32 }
  0x29   :  { %770 = vmatmul.mubr.bf16.vlgmr.msra.gmra.mxu1 %v821_v33  ;;  %778 = vmatpush3.bf16.msk.msra.mxu0 %vm1111_vm2, %v826_v12 }
  0x2a   :  { %809 = vmatpush3.bf16.msk.msra.mxu1 %vm1111_vm2, %v826_v12  ;;  %779 = vmatprep.subr.msk.bf16.mxu0 %vm1135_vm5, %v826_v12  ;;  %vm410_vm2 = vcmp.eq.s32.totalorder %v1030_v25, %v1096_v30 }
  0x2b   :  { %802 = vmatprep.subr.msk.bf16.mxu1 %vm1135_vm5, %v826_v12  ;;  %749 = vmatprep.mubr.bf16.mxu0 %v822_v35  ;;  %vm662_vm4 = vmpackc.low %vm411_vm3, %vm410_vm2 }
  0x2c   :  { %773 = vmatprep.mubr.bf16.mxu1 %v823_v36 }
  0x2d   :  { %780 = vmatpush3.bf16.msk.msra.mxu0 %vm1135_vm5, %v826_v12 }
  0x2e   :  { %810 = vmatpush3.bf16.msk.msra.mxu1 %vm1135_vm5, %v826_v12  ;;  %781 = vmatprep.subr.msk.bf16.mxu0 %vm1162_vm8, %v826_v12  ;;  %vm408_vm5 = vcmp.eq.s32.totalorder %v882_v3, %v1096_v30  ;;  %v680_v3 = vunpack.c.l.bf16 %v691_v57 }
  0x2f   :  { %803 = vmatprep.subr.msk.bf16.mxu1 %vm1162_vm8, %v826_v12  ;;  %vm664_vm7 = vmpackc.low %vm409_vm6, %vm408_vm5 }
  0x30   :  { %750 = vmatmul.mubr.bf16.gmra.mxu0 %v824_v38 }
  0x31   :  { %774 = vmatmul.mubr.bf16.gmra.mxu1 %v825_v39  ;;  %782 = vmatpush3.bf16.msk.msra.mxu0 %vm1162_vm8, %v826_v12 }
  0x32   :  { %811 = vmatpush3.bf16.msk.msra.mxu1 %vm1162_vm8, %v826_v12  ;;  %783 = vmatprep.subr.msk.bf16.mxu0 %vm656_vm11, %v826_v12 }
  0x33   :  { %804 = vmatprep.subr.msk.bf16.mxu1 %vm656_vm11, %v826_v12  ;;  %793 = vmatprep.mubr.bf16.mxu0 %v887_v4 }
  0x34   :  { %797 = vmatprep.mubr.bf16.mxu1 %v822_v35 }
  0x35   :  { %784 = vmatpush3.bf16.msk.msra.mxu0 %vm656_vm11, %v826_v12 }
  0x36   :  { %812 = vmatpush3.bf16.msk.msra.mxu1 %vm656_vm11, %v826_v12  ;;  %785 = vmatprep.subr.msk.bf16.mxu0 %vm658_vm14, %v826_v12 }
  0x37   :  { %805 = vmatprep.subr.msk.bf16.mxu1 %vm658_vm14, %v826_v12 }
  0x39   :  { %786 = vmatpush3.bf16.msk.msra.mxu0 %vm658_vm14, %v826_v12 }
  0x3a   :  { %813 = vmatpush3.bf16.msk.msra.mxu1 %vm658_vm14, %v826_v12  ;;  %787 = vmatprep.subr.msk.bf16.mxu0 %vm660_vm1, %v826_v12 }
  0x3b   :  { %806 = vmatprep.subr.msk.bf16.mxu1 %vm660_vm1, %v826_v12 }
  0x3d   :  { %788 = vmatpush3.bf16.msk.msra.mxu0 %vm660_vm1, %v826_v12 }
  0x3e   :  { %814 = vmatpush3.bf16.msk.msra.mxu1 %vm660_vm1, %v826_v12  ;;  %789 = vmatprep.subr.msk.bf16.mxu0 %vm662_vm4, %v826_v12 }
  0x3f   :  { %807 = vmatprep.subr.msk.bf16.mxu1 %vm662_vm4, %v826_v12 }
  0x41   :  { %790 = vmatpush3.bf16.msk.msra.mxu0 %vm662_vm4, %v826_v12 }
  0x42   :  { %815 = vmatpush3.bf16.msk.msra.mxu1 %vm662_vm4, %v826_v12  ;;  %791 = vmatprep.subr.msk.bf16.mxu0 %vm664_vm7, %v826_v12 }
  0x43   :  { %808 = vmatprep.subr.msk.bf16.mxu1 %vm664_vm7, %v826_v12 }
  0x45   :  { %792 = vmatpush3.bf16.msk.msra.mxu0 %vm664_vm7, %v826_v12 }
  0x46   :  { %816 = vmatpush3.bf16.msk.msra.mxu1 %vm664_vm7, %v826_v12 }
  0x48   :  { %794 = vmatmul.mubr.bf16.vlgmr.msra.gmra.mxu0 %v1118_v32 }
  0x49   :  { %798 = vmatmul.mubr.bf16.vlgmr.msra.gmra.mxu1 %v824_v38 }
  0xe8   :  { %v747_v40 = vpop.f32.mrf.mxu0 }
  0xe9   :  { %v771_v41 = vpop.f32.mrf.mxu1 }
  0xea   :  { %v208_v42 = vpop.f32.mrf.mxu0 }
  0xeb   :  { %v365_v43 = vpop.f32.mrf.mxu1 }
  0xec   :  { %v748_v44 = vpop.f32.mrf.mxu0 }
  0xed   :  { %v772_v45 = vpop.f32.mrf.mxu1 }
  0xee   :  { %v211_v46 = vpop.f32.mrf.mxu0 }
  0xef   :  { %v368_v47 = vpop.f32.mrf.mxu1 }
  0xf0   :  { %v751_v48 = vpop.f32.mrf.mxu0 }
  0xf1   :  { %v775_v49 = vpop.f32.mrf.mxu1  ;;  %v241_v15 = vmul.f32 %v751_v48, %v672_v0 }
  0xf2   :  { %v224_v50 = vpop.f32.mrf.mxu0  ;;  %v398_v17 = vmul.f32 %v775_v49, %v680_v3 }
  0xf3   :  { %v381_v51 = vpop.f32.mrf.mxu1  ;;  %v239_v6 = vmul.f32 %v668_v58, %v224_v50  ;;  %v245_v30 = vadd.f32 %v747_v40, %v241_v15 }
  0xf4   :  { %v752_v54 = vpop.f32.mrf.mxu0  ;;  %v396_v7 = vmul.f32 %v676_v59, %v381_v51  ;;  %v402_v32 = vadd.f32 %v771_v41, %v398_v17 }
  0xf5   :  { %v776_v55 = vpop.f32.mrf.mxu1  ;;  %v243_v21 = vadd.f32 %v239_v6, %v208_v42  ;;  %v242_v23 = vmul.f32 %v752_v54, %v673_v8 }
  0xf6   :  { %v227_v62 = vpop.f32.mrf.mxu0  ;;  %v400_v22 = vadd.f32 %v396_v7, %v365_v43  ;;  %v399_v26 = vmul.f32 %v776_v55, %v681_v10  ;;  %v539_v49 = vmul.f32 %v402_v32, %v245_v30 }
  0xf7   :  { %v384_v1 = vpop.f32.mrf.mxu1  ;;  %v240_v11 = vmul.f32 %v669_v61, %v227_v62  ;;  %v246_v37 = vadd.f32 %v748_v44, %v242_v23 }
  0xf8   :  { %v397_v12 = vmul.f32 %v677_v63, %v384_v1  ;;  %v537_v36 = vmul.f32 %v400_v22, %v243_v21  ;;  %v403_v39 = vadd.f32 %v772_v45, %v399_v26 }
  0xf9   :  { %v244_v27 = vadd.f32 %v240_v11, %v211_v46 }
  0xfa   :  { %v401_v28 = vadd.f32 %v397_v12, %v368_v47  ;;  %v540_v46 = vmul.f32 %v403_v39, %v246_v37 }
  0xfc   :  { %v538_v48 = vmul.f32 %v401_v28, %v244_v27 }
 0x108   :  { %v795_v4 = vpop.f32.mrf.mxu0 }
 0x109   :  { %v799_v9 = vpop.f32.mrf.mxu1 }
 0x10a   :  { %v498_v14 = vpop.f32.mrf.mxu0  ;;  %v531_v29 = vmul.f32 %v799_v9, %v688_v13 }
 0x10b   :  { %v514_v16 = vpop.f32.mrf.mxu1 }
 0x10c   :  { %v529_v18 = vmul.f32 %v684_v5, %v514_v16  ;;  %v796_v24 = vpop.f32.mrf.mxu0  ;;  %v535_v42 = vadd.f32 %v795_v4, %v531_v29 }
 0x10d   :  { %v800_v25 = vpop.f32.mrf.mxu1 }
 0x10e   :  { %v533_v33 = vadd.f32 %v529_v18, %v498_v14  ;;  %v532_v34 = vmul.f32 %v800_v25, %v689_v19  ;;  %v501_v38 = vpop.f32.mrf.mxu0  ;;  %v543_v47 = vmul.f32 %v539_v49, %v535_v42 }
 0x10f   :  { %v517_v31 = vpop.f32.mrf.mxu1 }
 0x110   :  { %v530_v35 = vmul.f32 %v685_v20, %v517_v31  ;;  %v541_v50 = vmul.f32 %v537_v36, %v533_v33  ;;  %v536_v51 = vadd.f32 %v796_v24, %v532_v34 }
 0x112   :  { %v534_v43 = vadd.f32 %v530_v35, %v501_v38  ;;  %v544_v40 = vmul.f32 %v540_v46, %v536_v51 }
 0x114   :  { %v542_v52 = vmul.f32 %v538_v48, %v534_v43 }
 0x116   :  { %v545_v53 = vadd.f32 %v542_v52, %v541_v50 }
 0x118   :  { %v546_v54 = vadd.f32 %v545_v53, %v543_v47 }
 0x11a   :  { %v547_v41 = vadd.f32 %v546_v54, %v544_v40 }
 0x11c   :  { %v548_v55 = vrot.slane %v547_v41, 4 }
 0x11e   :  { %v549_v56 = vadd.f32 %v548_v55, %v547_v41 }
 0x120   :  { %v550_v57 = vrot.slane %v549_v56, 2 }
 0x122   :  { %v551_v58 = vadd.f32 %v550_v57, %v549_v56 }
 0x124   :  { %v552_v44 = vrot.slane %v551_v58, 1 }
 0x126   :  { %v553_v59 = vadd.f32 %v552_v44, %v551_v58 }
 0x128   :  { %554 = vst [vmem:[%s1261_s8] sm:$0x1] %v553_v59 }

</bundles_post_ra>
